<compile_context>
chip_gen: v5e
topology: v5e:2x2
jax: 0.10.0
libtpu: 0.0.40
codegen_flags: <defaults>
</compile_context>

<pallas_src>
import functools

import jax
import jax.numpy as jnp
from jax.experimental import pallas as pl
from jax.experimental.pallas import tpu as pltpu

# Problem sizes fixed by the module.
L = 1              # batch
C_IN = 64          # x channels (contraction index of einsum 1)
M = 28             # x spatial dim m
N = 28             # x spatial dim n
MN = M * N         # 784
K2 = 2             # W2 leading dim == W1 middle dim
J = 18             # trailing dim of W1 / W2
C_OUT = 256        # output channels
C_HALF = C_OUT // 2  # per-grid-step output-channel block (one per TC on v7x)


def _fused_kernel(xt_ref, w_ref, o_ref, *, shift):
    """One dense MXU dot: o_block = W_block @ [xt ; roll(xt, 28*shift)].

    xt_ref: [64, 784]  f32, column index = m_out*28 + n_out (x spatially swapped)
    w_ref : [128, 128] f32, folded weights [A|B] (shift=+1) or [B|A] (shift=-1)
    o_ref : [128, 784] f32, channel-major output block
    """
    xt = xt_ref[...]                                              # [64, 784]

    # roll(xt, 28*shift) along the flattened spatial columns, written as a
    # static lane-slice concat (pltpu.roll needs a 128-multiple lane dim;
    # 784 = 6*128 + 16 is not).  Cost is ~50 vregs of data movement - noise
    # next to the [*,128]x[128,784] dot below.
    cut = (-N * shift) % MN                                       # 756 or 28
    rolled = jnp.concatenate([xt[:, cut:], xt[:, :cut]], axis=-1)

    # Stack along the contraction axis (sublane concat, 64|64 -> 128 rows).
    xs = jnp.concatenate([xt, rolled], axis=0)                    # [128, 784]

    # Single dense MXU dot, f32 accumulation.
    o_ref[...] = jnp.dot(w_ref[...], xs, preferred_element_type=jnp.float32)


def _make_fused_call(shift):
    kernel = functools.partial(_fused_kernel, shift=shift)
    flops = 2 * C_OUT * (2 * C_IN) * MN                            # ~51 MFLOP
    bytes_accessed = 4 * (C_IN * MN + C_OUT * 2 * C_IN + C_OUT * MN)
    return pl.pallas_call(
        kernel,
        out_shape=jax.ShapeDtypeStruct((C_OUT, MN), jnp.float32),
        grid=(2,),
        in_specs=[
            # xt: whole array, same block every step (no re-fetch).
            pl.BlockSpec((C_IN, MN), lambda i: (0, 0)),
            # folded weights: 128-output-channel block per step.
            pl.BlockSpec((C_HALF, 2 * C_IN), lambda i: (i, 0)),
        ],
        out_specs=pl.BlockSpec((C_HALF, MN), lambda i: (i, 0)),
        compiler_params=pltpu.CompilerParams(
            # v7x: the two TensorCores split the output channels; v5e/v6e just
            # run two cheap sequential steps.
            dimension_semantics=("parallel",),
            # Let XLA fold the spatial-swap producer into the xt operand.
            allow_input_fusion=[True, False],
        ),
        cost_estimate=pl.CostEstimate(flops=flops, transcendentals=0,
                                      bytes_accessed=bytes_accessed),
    )


@functools.partial(jax.jit, static_argnames=("shift",))
def kernel_generated_4_forward(x, w1, w2, shift=1):
    """x: [1,64,28,28], w1: [256,2,18], w2: [2,64,18] -> y: [1,256,28,28]."""
    assert shift in (1, -1)
    hi = jax.lax.Precision.HIGHEST
    # Weight fold (tiny: two [256,18]@[18,64] products; HIGHEST keeps f32 tight).
    a = jnp.einsum('ok,ik->oi', w1[:, 1, :], w2[0], precision=hi)  # pairs with xt     (shift=+1)
    b = jnp.einsum('ok,ik->oi', w1[:, 0, :], w2[1], precision=hi)  # pairs with rolled (shift=+1)
    w = jnp.concatenate([a, b] if shift == 1 else [b, a], axis=1)  # [256, 128]
    # Minor-pair spatial swap of x: the composed op inherently exchanges the two
    # 28x28 spatial axes, and doing it on the 200 KB input (not the 800 KB
    # output) is the cheap side.  allow_input_fusion above lets XLA fuse this
    # producer into the pallas_call operand.
    xt = jnp.swapaxes(x[0], 1, 2).reshape(C_IN, MN)                # [64, 784]
    out2d = _make_fused_call(shift)(xt, w)                         # [256, 784]
    return out2d.reshape(L, C_OUT, M, N)                           # free view


def _reference(x, w1, w2, shift):
    hi = jax.lax.Precision.HIGHEST
    t3 = jnp.einsum('limn,kij->lnkmj', x, w2, precision=hi)
    t4 = jnp.roll(t3.reshape(1, 56, 28, 18), shift, axis=1)
    t4 = t4.reshape(1, 28, 2, 28, 18)
    return jnp.einsum('lmjnk,ijk->limn', t4, w1, precision=hi)


if __name__ == "__main__":
    key = jax.random.PRNGKey(0)
    kx, k1, k2 = jax.random.split(key, 3)
    x = jax.random.normal(kx, (L, C_IN, M, N), dtype=jnp.float32)
    w1 = jax.random.normal(k1, (C_OUT, K2, J), dtype=jnp.float32)   # weights[0]
    w2 = jax.random.normal(k2, (K2, C_IN, J), dtype=jnp.float32)    # weights[1]

    # The torch module picks shift = +1 or -1 randomly at __init__; here it is a
    # static parameter, validated for both possible values.
    for shift in (1, -1):
        y = kernel_generated_4_forward(x, w1, w2, shift=shift)
        jax.block_until_ready(y)
        assert y.shape == (1, 256, 28, 28), y.shape
        y_ref = _reference(x, w1, w2, shift)
        err = float(jnp.max(jnp.abs(y - y_ref)))
        assert jnp.allclose(y, y_ref, rtol=1e-3, atol=1e-2), err

    print("KERNEL_OK")
</pallas_src>

<mosaic_0001>
module attributes {stable_mosaic.version = 11 : i64} {
  func.func @_fused_kernel(%arg0: i32, %arg1: memref<64x784xf32, #tpu.memory_space<vmem>>, %arg2: memref<128x128xf32, #tpu.memory_space<vmem>>, %arg3: memref<128x784xf32, #tpu.memory_space<vmem>>) attributes {dimension_semantics = [#tpu.dimension_semantics<parallel>], iteration_bounds = array<i64: 2>, scalar_prefetch = 0 : i64, scratch_operands = 0 : i64, tpu.core_type = #tpu.core_type<tc>, window_params = [{pipeline_mode = #tpu.pipeline_mode<synchronous>, transform_indices = @transform_0, window_bounds = array<i64: 64, 784>}, {transform_indices = @transform_1, window_bounds = array<i64: 128, 128>}, {transform_indices = @transform_2, window_bounds = array<i64: 128, 784>}]} {
    %c0 = arith.constant 0 : index
    %c0_0 = arith.constant 0 : index
    %0 = vector.load %arg1[%c0, %c0_0] : memref<64x784xf32, #tpu.memory_space<vmem>>, vector<64x784xf32>
    %1 = vector.extract_strided_slice %0 {offsets = [0, 756], sizes = [64, 28], strides = [1, 1]} : vector<64x784xf32> to vector<64x28xf32>
    %2 = vector.extract_strided_slice %0 {offsets = [0, 0], sizes = [64, 756], strides = [1, 1]} : vector<64x784xf32> to vector<64x756xf32>
    %3 = tpu.concatenate %1, %2 in 1 : vector<64x28xf32>, vector<64x756xf32> -> vector<64x784xf32>
    %4 = tpu.concatenate %0, %3 in 0 : vector<64x784xf32>, vector<64x784xf32> -> vector<128x784xf32>
    %c0_1 = arith.constant 0 : index
    %c0_2 = arith.constant 0 : index
    %5 = vector.load %arg2[%c0_1, %c0_2] : memref<128x128xf32, #tpu.memory_space<vmem>>, vector<128x128xf32>
    %cst = arith.constant dense<0.000000e+00> : vector<128x784xf32>
    %6 = tpu.matmul %5, %4, %cst {dimension_numbers = #tpu.dot_dimension_numbers<[1], [0], [0], [1], [0, 0, 1, 1], [], []>} : vector<128x128xf32>, vector<128x784xf32>, vector<128x784xf32> -> vector<128x784xf32>
    %c0_3 = arith.constant 0 : index
    %c0_4 = arith.constant 0 : index
    %7 = vector.load %arg3[%c0_3, %c0_4] : memref<128x784xf32, #tpu.memory_space<vmem>>, vector<128x784xf32>
    tpu.vector_store %arg3[%c0_3, %c0_4], %6 {strides = array<i32>} : memref<128x784xf32, #tpu.memory_space<vmem>>, vector<128x784xf32>,
    return
  }
  func.func @transform_0(%arg0: i32) -> (i32, i32) {
    %c0_i32 = arith.constant 0 : i32
    %c0_i32_0 = arith.constant 0 : i32
    %c0_i32_1 = arith.constant 0 : i32
    return %c0_i32, %c0_i32_0 : i32, i32
  }
  func.func @transform_1(%arg0: i32) -> (i32, i32) {
    %c0_i32 = arith.constant 0 : i32
    %c0_i32_0 = arith.constant 0 : i32
    return %arg0, %c0_i32 : i32, i32
  }
  func.func @transform_2(%arg0: i32) -> (i32, i32) {
    %c0_i32 = arith.constant 0 : i32
    %c0_i32_0 = arith.constant 0 : i32
    return %arg0, %c0_i32 : i32, i32
  }
}

</mosaic_0001>

<bundles_post_ra>
// kernel: kernel_generated_4_forward.1
= control target key start
LH: loop header
LB: loop body
LE: loop exit
PB: predicated region body
PF: predicated region fallthrough
CT: control target
= control target key end

     0   :  { %s1408_s9 = smov 0   ;;  %s2481_s0 = inlined_call_operand.vmem [shape: f32[64,784], index: 0, kind: input, shape index: {}]   ;;  %s2482_s1 = inlined_call_operand.vmem [shape: f32[256,128], index: 1, kind: input, shape index: {}]   ;;  %s2483_s2 = inlined_call_operand.vmem [shape: f32[256,784], index: 2, kind: output, shape index: {}]  }
   0x1 LB: > { %s1153_s10 = sadd.s32 4294967295, %s1389_s9   ;;  %p1157_p0 = scmp.ge.s32.totalorder %s1389_s9, 1  ;;  %s1389_s9 = sphi %s1408_s9, %s12_s9  }
   0x2   : > { %p113_p1 = scmp.lt.s32.totalorder %s1389_s9, 3 }
   0x4   : > { %p114_p2 = pnand %p1157_p0, %p113_p1 }
   0x6   : > { %117 = sbr.rel (%p114_p2) target bundleno = 552 (0x228), region = 28 }
   0xb   : > { %v1419_v0 = vld [vmem:[%s2481_s0 + $0x1b0] sm:$0xff]  ;;  %v1424_v1 = vld [vmem:[%s2481_s0 + $0x1b8] sm:$0xff]  ;;  %v1436_v4 = vld [vmem:[%s2481_s0 + $0x160] sm:$0xff]  ;;  %s1391_s23 = smov 12   ;;  %s1392_s26 = smov 28   ;;  %vm253_vm0 = vcmask 97280  }
   0xc   : > { %v1429_v2 = vld [vmem:[%s2481_s0 + $0x158] sm:$0xff]  ;;  %v1223_v3 = vpack.i.bf16 %v1424_v1, %v1419_v0  ;;  %v1441_v5 = vld [vmem:[%s2481_s0 + $0x150] sm:$0xff]  ;;  %v1456_v9 = vld [vmem:[%s2481_s0 + $0x188] sm:$0xff]  ;;  %vm406_vm1 = vcmask 228352   ;;  %vm988_vm2 = vcmask 130048  }
   0xd   : > { %v1446_v6 = vld [vmem:[%s2481_s0 + $0x198] sm:$0xff]  ;;  %v1243_v7 = vpack.i.bf16 %v1436_v4, %v1429_v2  ;;  %v1463_v10 = vld [vmem:[%s2481_s0 + $0x190] sm:$0xff]  ;;  %v1473_v12 = vld [vmem:[%s2481_s0 + $0x180] sm:$0xff] }
   0xe   : > { %v1233_v8 = vpack.i.bf16 %v1441_v5, %v1446_v6  ;;  %1224 = vrot.lane.b32.xlu0 %v1223_v3, %s1391_s23  ;;  %v1468_v11 = vld [vmem:[%s2481_s0 + $0x178] sm:$0xff]  ;;  %v1478_v13 = vld [vmem:[%s2481_s0 + $0x140] sm:$0xff]  ;;  %v1483_v14 = vld [vmem:[%s2481_s0 + $0x148] sm:$0xff]  ;;  %v1228_v15 = vpack.i.bf16 %v1463_v10, %v1456_v9 }
   0xf   : > { %1244 = vrot.lane.b32.xlu2 %v1243_v7, %s1392_s26  ;;  %v1238_v16 = vpack.i.bf16 %v1473_v12, %v1468_v11  ;;  %v1248_v17 = vpack.i.bf16 %v1483_v14, %v1478_v13  ;;  %v1495_v18 = vld [vmem:[%s2481_s0 + $0x118] sm:$0xff]  ;;  %v1502_v19 = vld [vmem:[%s2481_s0 + $0x120] sm:$0xff]  ;;  %v1507_v20 = vld [vmem:[%s2481_s0 + $0x108] sm:$0xff] }
  0x10   : > { %1234 = vrot.lane.b32.xlu1 %v1233_v8, %s1392_s26  ;;  %v1512_v21 = vld [vmem:[%s2481_s0 + $0x110] sm:$0xff]  ;;  %v1517_v22 = vld [vmem:[%s2481_s0 + $0xe0] sm:$0xff]  ;;  %v1522_v23 = vld [vmem:[%s2481_s0 + $0x128] sm:$0xff]  ;;  %v1253_v24 = vpack.i.bf16 %v1502_v19, %v1495_v18 }
  0x11   : > { %v1263_v25 = vpack.i.bf16 %v1512_v21, %v1507_v20  ;;  %v1258_v26 = vpack.i.bf16 %v1517_v22, %v1522_v23  ;;  %v1534_v27 = vld [vmem:[%s2481_s0 + $0xe8] sm:$0xff]  ;;  %v1541_v28 = vld [vmem:[%s2481_s0 + $0xf0] sm:$0xff]  ;;  %v1551_v30 = vld [vmem:[%s2481_s0 + $0xd8] sm:$0xff] }
  0x12   : > { %v1546_v29 = vld [vmem:[%s2481_s0 + $0xd0] sm:$0xff]  ;;  %2524 = vst [vmem:[#allocation3_spill] sm:$0xff] %v1551_v30  ;;  %v1556_v31 = vld [vmem:[%s2481_s0 + $0xa8] sm:$0xff]  ;;  %v1268_v33 = vpack.i.bf16 %v1541_v28, %v1534_v27  ;;  %v1573_v36 = vld [vmem:[%s2481_s0 + $0x98] sm:$0xff] }
  0x13   : > { %2523 = vst [vmem:[#allocation2_spill] sm:$0xff] %v1546_v29  ;;  %v1561_v32 = vld [vmem:[%s2481_s0 + $0xb0] sm:$0xff]  ;;  %v1273_v34 = vpack.i.bf16 %v1551_v30, %v1546_v29  ;;  %v1585_v38 = vld [vmem:[%s2481_s0 + $0xb8] sm:$0xff]  ;;  %v1590_v39 = vld [vmem:[%s2481_s0 + $0xa0] sm:$0xff] }
  0x14   : > { %v1278_v35 = vpack.i.bf16 %v1561_v32, %v1556_v31  ;;  %2525 = vst [vmem:[#allocation4_spill] sm:$0xff] %v1573_v36  ;;  %v1580_v37 = vld [vmem:[%s2481_s0 + $0x70] sm:$0xff]  ;;  %v1595_v40 = vld [vmem:[%s2481_s0 + $0x78] sm:$0xff]  ;;  %v1600_v41 = vld [vmem:[%s2481_s0 + $0x80] sm:$0xff]  ;;  %v1288_v43 = vpack.i.bf16 %v1590_v39, %v1573_v36 }
  0x15   : > { %2526 = vst [vmem:[#allocation5_spill] sm:$0xff] %v1590_v39  ;;  %v1283_v42 = vpack.i.bf16 %v1580_v37, %v1585_v38  ;;  %v1293_v44 = vpack.i.bf16 %v1600_v41, %v1595_v40  ;;  %v1612_v45 = vld [vmem:[%s2481_s0 + $0x60] sm:$0xff]  ;;  %v1619_v46 = vld [vmem:[%s2481_s0 + $0x68] sm:$0xff]  ;;  %v1624_v47 = vld [vmem:[%s2481_s0 + $0x38] sm:$0xff] }
  0x16   : > { %1229 = vrot.lane.b32.xlu0 %v1228_v15, %s1392_s26  ;;  %2527 = vst [vmem:[#allocation6_spill] sm:$0xff] %v1612_v45  ;;  %v1629_v48 = vld [vmem:[%s2481_s0 + $0x40] sm:$0xff]  ;;  %v1639_v50 = vld [vmem:[%s2481_s0 + $0x48] sm:$0xff]  ;;  %v1298_v51 = vpack.i.bf16 %v1619_v46, %v1612_v45  ;;  %v1658_v55 = vld [vmem:[%s2481_s0 + $0x30] sm:$0xff] }
  0x17   : > { %1249 = vrot.lane.b32.xlu2 %v1248_v17, %s1391_s23  ;;  %2528 = vst [vmem:[#allocation7_spill] sm:$0xff] %v1619_v46  ;;  %v1634_v49 = vld [vmem:[%s2481_s0] sm:$0xff]  ;;  %v1303_v52 = vpack.i.bf16 %v1629_v48, %v1624_v47  ;;  %v1653_v54 = vld [vmem:[%s2481_s0 + $0x28] sm:$0xff]  ;;  %v1668_v57 = vld [vmem:[%s2481_s0 + $0x10] sm:$0xff] }
  0x18   : > { %1239 = vrot.lane.b32.xlu1 %v1238_v16, %s1391_s23  ;;  %2529 = vst [vmem:[#allocation8_spill] sm:$0xff] %v1639_v50  ;;  %v1308_v53 = vpack.i.bf16 %v1634_v49, %v1639_v50  ;;  %v1663_v56 = vld [vmem:[%s2481_s0 + $0x8] sm:$0xff]  ;;  %v1673_v58 = vld [vmem:[%s2481_s0 + $0x1a0] sm:$0xff]  ;;  %v1313_v59 = vpack.i.bf16 %v1658_v55, %v1653_v54  ;;  %v1692_v63 = vld [vmem:[%s2481_s0 + $0x130] sm:$0xff] }
  0x19   : > { %2530 = vst [vmem:[#allocation9_spill] sm:$0xff] %v1653_v54  ;;  %v1318_v60 = vpack.i.bf16 %v1668_v57, %v1663_v56  ;;  %v1323_v61 = vpack.i.bf16 %v1419_v0, %v1673_v58  ;;  %v1687_v62 = vld [vmem:[%s2481_s0 + $0x168] sm:$0xff]  ;;  %v1697_v3 = vld [vmem:[%s2481_s0 + $0xf8] sm:$0xff]  ;;  %v1333_v15 = vpack.i.bf16 %v1478_v13, %v1692_v63  ;;  %v1716_v17 = vld [vmem:[%s2481_s0 + $0xc0] sm:$0xff] }
  0x1a   : > { %2531 = vst [vmem:[#allocation10_spill] sm:$0xff] %v1658_v55  ;;  %v1702_v7 = vld [vmem:[%s2481_s0 + $0x1a8] sm:$0xff]  ;;  %v1328_v8 = vpack.i.bf16 %v1468_v11, %v1687_v62 }
  0x1b   : > { %2532 = vst [vmem:[#allocation11_spill] sm:$0xff] %v1668_v57  ;;  %v1338_v16 = vpack.i.bf16 %v1702_v7, %v1697_v3 }
  0x1c   : > { %2533 = vst [vmem:[#allocation12_spill] sm:$0xff] %v1702_v7 }
  0x1d   : > { %2534 = vst [vmem:[#allocation13_spill] sm:$0xff] %v1716_v17 }
  0x1e   : > { %1254 = vrot.lane.b32.xlu0 %v1253_v24, %s1392_s26  ;;  %v1721_v24 = vld [vmem:[%s2481_s0 + $0x170] sm:$0xff] }
  0x1f   : > { %1264 = vrot.lane.b32.xlu2 %v1263_v25, %s1391_s23  ;;  %2535 = vst [vmem:[#allocation14_spill] sm:$0xff] %v1721_v24  ;;  %v1726_v25 = vld [vmem:[%s2481_s0 + $0x88] sm:$0xff] }
  0x20   : > { %1259 = vrot.lane.b32.xlu1 %v1258_v26, %s1392_s26  ;;  %2536 = vst [vmem:[#allocation15_spill] sm:$0xff] %v1726_v25  ;;  %v1731_v26 = vld [vmem:[%s2481_s0 + $0x138] sm:$0xff] }
  0x21   : > { %2537 = vst [vmem:[#allocation16_spill] sm:$0xff] %v1731_v26 }
  0x26   : > { %1269 = vrot.lane.b32.xlu0 %v1268_v33, %s1392_s26  ;;  %v1343_v33 = vpack.i.bf16 %v1716_v17, %v1507_v20 }
  0x27   : > { %1279 = vrot.lane.b32.xlu2 %v1278_v35, %s1392_s26  ;;  %v1353_v35 = vpack.i.bf16 %v1731_v26, %v1726_v25 }
  0x28   : > { %1274 = vrot.lane.b32.xlu1 %v1273_v34, %s1391_s23  ;;  %v1348_v34 = vpack.i.bf16 %v1546_v29, %v1721_v24 }
  0x2e   : > { %1284 = vrot.lane.b32.xlu0 %v1283_v42, %s1392_s26  ;;  %v1745_v42 = vld [vmem:[%s2481_s0 + $0x50] sm:$0xff] }
  0x2f   : > { %1294 = vrot.lane.b32.xlu2 %v1293_v44, %s1392_s26  ;;  %2538 = vst [vmem:[#allocation17_spill] sm:$0xff] %v1745_v42  ;;  %v1755_v44 = vld [vmem:[%s2481_s0 + $0x18] sm:$0xff] }
  0x30   : > { %1289 = vrot.lane.b32.xlu1 %v1288_v43, %s1391_s23  ;;  %v1750_v43 = vld [vmem:[%s2481_s0 + $0x100] sm:$0xff]  ;;  %2540 = vst [vmem:[#allocation19_spill] sm:$0xff] %v1755_v44 }
  0x31   : > { %2539 = vst [vmem:[#allocation18_spill] sm:$0xff] %v1750_v43 }
  0x36   : > { %1299 = vrot.lane.b32.xlu0 %v1298_v51, %s1391_s23  ;;  %v1760_v51 = vld [vmem:[%s2481_s0 + $0xc8] sm:$0xff] }
  0x37   : > { %1309 = vrot.lane.b32.xlu2 %v1308_v53, %s1392_s26  ;;  %2541 = vst [vmem:[#allocation20_spill] sm:$0xff] %v1760_v51  ;;  %v1363_v53 = vpack.i.bf16 %v1612_v45, %v1750_v43 }
  0x38   : > { %1304 = vrot.lane.b32.xlu1 %v1303_v52, %s1392_s26  ;;  %v1358_v52 = vpack.i.bf16 %v1745_v42, %v1573_v36 }
  0x3e   : > { %1314 = vrot.lane.b32.xlu0 %v1313_v59, %s1391_s23  ;;  %v1368_v59 = vpack.i.bf16 %v1760_v51, %v1755_v44 }
  0x3f   : > { %1324 = vrot.lane.b32.xlu2 %v1323_v61, %s1392_s26  ;;  %v1779_v61 = vld [vmem:[%s2481_s0 + $0x20] sm:$0xff] }
  0x40   : > { %1319 = vrot.lane.b32.xlu1 %v1318_v60, %s1392_s26  ;;  %v1774_v60 = vld [vmem:[%s2481_s0 + $0x90] sm:$0xff]  ;;  %2543 = vst [vmem:[#allocation22_spill] sm:$0xff] %v1779_v61 }
  0x41   : > { %2542 = vst [vmem:[#allocation21_spill] sm:$0xff] %v1774_v60 }
  0x46   : > { %1329 = vrot.lane.b32.xlu0 %v1328_v8, %s1392_s26  ;;  %v1784_v8 = vld [vmem:[%s2481_s0 + $0x58] sm:$0xff] }
  0x47   : > { %1339 = vrot.lane.b32.xlu2 %v1338_v16, %s1392_s26  ;;  %2544 = vst [vmem:[#allocation23_spill] sm:$0xff] %v1784_v8  ;;  %v1378_v16 = vpack.i.bf16 %v1779_v61, %v1784_v8 }
  0x48   : > { %1334 = vrot.lane.b32.xlu1 %v1333_v15, %s1392_s26  ;;  %v1373_v15 = vpack.i.bf16 %v1774_v60, %v1653_v54 }
  0x4e   : > { %1344 = vrot.lane.b32.xlu0 %v1343_v33, %s1392_s26 }
  0x4f   : > { %1354 = vrot.lane.b32.xlu2 %v1353_v35, %s1392_s26 }
  0x50   : > { %1349 = vrot.lane.b32.xlu1 %v1348_v34, %s1392_s26 }
  0x56   : > { %1359 = vrot.lane.b32.xlu0 %v1358_v52, %s1392_s26 }
  0x57   : > { %1369 = vrot.lane.b32.xlu2 %v1368_v59, %s1392_s26 }
  0x58   : > { %1364 = vrot.lane.b32.xlu1 %v1363_v53, %s1392_s26 }
  0x5e   : > { %1374 = vrot.lane.b32.xlu0 %v1373_v15, %s1392_s26 }
  0x60   : > { %1379 = vrot.lane.b32.xlu1 %v1378_v16, %s1392_s26  ;;  %s1158_s26 = sshll.u32 %s1153_s10, 4 }
  0x61   : > { %p137_p3 = scmp.lt.s32.totalorder %s1158_s26, 31 }
  0x63   : > { %s2600_s26 = smov (!%p137_p3, %s1158_s26), 31 }
  0x64   : > { %s1159_s10 = sshll.u32 %s2600_s26, 3  ;;  %s1212_s30 = smul.u32 56, %s2600_s26 }
  0x65   : > { %s1966_s29 = scalar_lea.vmem %s2482_s1, %s1159_s10 }
  0x66   : > { %s2300_s5 = scalar_lea.vmem %s2483_s2, %s1212_s30 }
  0x69   : > { %v1792_v33 = vpop.permute.xlu2 %1244 }
  0x6a   : > { %v1246_v61 = vunpack.i.l.bf16 %v1792_v33 }
  0x71   : > { %v1250_v34 = vpop.permute.xlu2 %1249 }
  0x72   : > { %v1252_v44 = vunpack.i.h.bf16 %v1250_v34  ;;  %v1251_v46 = vunpack.i.l.bf16 %v1250_v34 }
  0x79   : > { %v1265_v43 = vpop.permute.xlu2 %1264 }
  0x7a   : > { %v1267_v42 = vunpack.i.h.bf16 %v1265_v43 }
  0x80   : > { %v1225_v35 = vpop.permute.xlu0 %1224 }
  0x81   : > { %v1227_v53 = vunpack.i.h.bf16 %v1225_v35  ;;  %v1226_v59 = vunpack.i.l.bf16 %v1225_v35 }
  0x82   : > { %v1794_v52 = vpop.permute.xlu1 %1234 }
  0x83   : > { %v2498_v15 = vunpack.i.l.bf16 %v1794_v52  ;;  %v1237_v24 = vunpack.i.h.bf16 %v1794_v52  ;;  %v261_v55 = vsel %vm253_vm0, %v1226_v59, %v1227_v53 }
  0x85   : > { %v1815_v53 = vsel %vm406_vm1, %v1237_v24, %v1246_v61 }
  0x88   : > { %v1230_v60 = vpop.permute.xlu0 %1229 }
  0x89   : > { %v1232_v8 = vunpack.i.h.bf16 %v1230_v60  ;;  %v1231_v16 = vunpack.i.l.bf16 %v1230_v60 }
  0x8a   : > { %v1240_v26 = vpop.permute.xlu1 %1239 }
  0x8b   : > { %v1242_v7 = vunpack.i.h.bf16 %v1240_v26  ;;  %v1241_v54 = vunpack.i.l.bf16 %v1240_v26  ;;  %v510_v35 = vsel %vm406_vm1, %v261_v55, %v1231_v16  ;;  %v1803_v51 = vsel %vm406_vm1, %v1231_v16, %v1232_v8 }
  0x8c   : > { %v1808_v45 = vsel %vm406_vm1, %v1232_v8, %v2498_v15  ;;  %527 = vmatpush.msra.mxu0 %v510_v35  ;;  %1164 = vmatpush.msra.mxu3 %v510_v35  ;;  %v1266_v26 = vunpack.i.l.bf16 %v1265_v43  ;;  %v2545_v8 = vunpack.i.h.bf16 %v1792_v33 }
  0x8d   : > { %v260_v60 = vsel %vm253_vm0, %v1241_v54, %v1242_v7  ;;  %1180 = vmatpush.msra.mxu1 %v1803_v51  ;;  %1196 = vmatpush.msra.mxu2 %v1808_v45  ;;  %v259_v7 = vsel %vm253_vm0, %v1251_v46, %v1252_v44 }
  0x8e   : > { %v509_v55 = vsel %vm406_vm1, %v260_v60, %v1237_v24  ;;  %v1820_v34 = vsel %vm406_vm1, %v1246_v61, %v2545_v8  ;;  %v258_v35 = vsel %vm253_vm0, %v1266_v26, %v1267_v42  ;;  %v1280_v24 = vpop.permute.xlu2 %1279 }
  0x8f   : > { %528 = vmatpush.msra.mxu0 %v509_v55  ;;  %1165 = vmatpush.msra.mxu3 %v509_v55  ;;  %2546 = vst [vmem:[#allocation24_spill] sm:$0xff] %v1820_v34  ;;  %v1282_v42 = vunpack.i.h.bf16 %v1280_v24 }
  0x90   : > { %1181 = vmatpush.msra.mxu1 %v1815_v53  ;;  %1197 = vmatpush.msra.mxu2 %v1820_v34  ;;  %v1255_v54 = vpop.permute.xlu0 %1254 }
  0x91   : > { %v1257_v43 = vunpack.i.h.bf16 %v1255_v54  ;;  %v1256_v59 = vunpack.i.l.bf16 %v1255_v54  ;;  %v1281_v54 = vunpack.i.l.bf16 %v1280_v24 }
  0x92   : > { %v1825_v16 = vpop.permute.xlu1 %1259 }
  0x93   : > { %v1262_v60 = vunpack.i.h.bf16 %v1825_v16  ;;  %v2499_v55 = vunpack.i.l.bf16 %v1825_v16  ;;  %v508_v61 = vsel %vm406_vm1, %v259_v7, %v1256_v59  ;;  %v1832_v8 = vsel %vm406_vm1, %v1256_v59, %v1257_v43 }
  0x94   : > { %529 = vmatpush.msra.mxu0 %v508_v61  ;;  %1166 = vmatpush.msra.mxu3 %v508_v61  ;;  %v1860_v36 = vsel %vm406_vm1, %v1281_v54, %v1282_v42 }
  0x95   : > { %v1837_v46 = vsel %vm406_vm1, %v1257_v43, %v2499_v55  ;;  %v507_v44 = vsel %vm406_vm1, %v258_v35, %v1262_v60  ;;  %1182 = vmatpush.msra.mxu1 %v1832_v8 }
  0x96   : > { %2547 = vst [vmem:[#allocation25_spill] sm:$0xff] %v1837_v46  ;;  %1198 = vmatpush.msra.mxu2 %v1837_v46  ;;  %530 = vmatpush.msra.mxu0 %v507_v44 }
  0x97   : > { %1167 = vmatpush.msra.mxu3 %v507_v44  ;;  %v1854_v44 = vpop.permute.xlu2 %1294 }
  0x98   : > { %v1842_v26 = vpop.permute.xlu0 %1269 }
  0x99   : > { %v2501_v7 = vunpack.i.h.bf16 %v1842_v26  ;;  %v1271_v59 = vunpack.i.l.bf16 %v1842_v26 }
  0x9a   : > { %v1275_v61 = vpop.permute.xlu1 %1274 }
  0x9b   : > { %v1277_v15 = vunpack.i.h.bf16 %v1275_v61  ;;  %v1276_v43 = vunpack.i.l.bf16 %v1275_v61  ;;  %v1847_v55 = vsel %vm406_vm1, %v1262_v60, %v1271_v59  ;;  %v1852_v35 = vsel %vm406_vm1, %v1271_v59, %v2501_v7 }
  0x9c   : > { %2548 = vst [vmem:[#allocation26_spill] sm:$0xff] %v1852_v35  ;;  %1183 = vmatpush.msra.mxu1 %v1847_v55  ;;  %1199 = vmatpush.msra.mxu2 %v1852_v35  ;;  %v1296_v60 = vunpack.i.l.bf16 %v1854_v44  ;;  %v2513_v59 = vunpack.i.h.bf16 %v1854_v44 }
  0x9d   : > { %v257_v24 = vsel %vm253_vm0, %v1276_v43, %v1277_v15 }
  0x9e   : > { %v506_v61 = vsel %vm406_vm1, %v257_v24, %v1281_v54  ;;  %1184 = vmatpush.msra.mxu1 %v1860_v36 }
  0x9f   : > { %531 = vmatpush.msra.mxu0 %v506_v61  ;;  %1168 = vmatpush.msra.mxu3 %v506_v61  ;;  %v1884_v61 = vsel %vm406_vm1, %v1296_v60, %v2513_v59  ;;  %v1887_v46 = vpop.permute.xlu2 %1309 }
  0xa0   : > { %v1866_v7 = vpop.permute.xlu0 %1284 }
  0xa1   : > { %v1287_v35 = vunpack.i.h.bf16 %v1866_v7  ;;  %v2507_v15 = vunpack.i.l.bf16 %v1866_v7 }
  0xa2   : > { %v1290_v39 = vpop.permute.xlu1 %1289 }
  0xa3   : > { %v1292_v43 = vunpack.i.h.bf16 %v1290_v39  ;;  %v1291_v25 = vunpack.i.l.bf16 %v1290_v39  ;;  %v1871_v29 = vsel %vm406_vm1, %v1287_v35, %v1296_v60  ;;  %v1876_v54 = vsel %vm406_vm1, %v1282_v42, %v2507_v15 }
  0xa4   : > { %2549 = vst [vmem:[#allocation27_spill] sm:$0xff] %v1876_v54  ;;  %1185 = vmatpush.msra.mxu1 %v1871_v29  ;;  %1200 = vmatpush.msra.mxu2 %v1876_v54  ;;  %v2512_v42 = vunpack.i.l.bf16 %v1887_v46 }
  0xa5   : > { %v256_v24 = vsel %vm253_vm0, %v1291_v25, %v1292_v43 }
  0xa6   : > { %v505_v39 = vsel %vm406_vm1, %v256_v24, %v1287_v35  ;;  %1201 = vmatpush.msra.mxu2 %v1884_v61 }
  0xa7   : > { %532 = vmatpush.msra.mxu0 %v505_v39  ;;  %1169 = vmatpush.msra.mxu3 %v505_v39 }
  0xa8   : > { %v1300_v15 = vpop.permute.xlu0 %1299 }
  0xa9   : > { %v1302_v30 = vunpack.i.h.bf16 %v1300_v15  ;;  %v1301_v54 = vunpack.i.l.bf16 %v1300_v15 }
  0xaa   : > { %v1305_v17 = vpop.permute.xlu1 %1304 }
  0xab   : > { %v1307_v25 = vunpack.i.h.bf16 %v1305_v17  ;;  %v1306_v43 = vunpack.i.l.bf16 %v1305_v17  ;;  %v255_v34 = vsel %vm253_vm0, %v1301_v54, %v1302_v30  ;;  %v1312_v17 = vunpack.i.h.bf16 %v1887_v46  ;;  %v1904_v30 = vpop.permute.xlu2 %1324 }
  0xad   : > { %v504_v60 = vsel %vm406_vm1, %v255_v34, %v1306_v43  ;;  %v1894_v35 = vsel %vm406_vm1, %v1306_v43, %v1307_v25  ;;  %v1899_v24 = vsel %vm406_vm1, %v1307_v25, %v2512_v42 }
  0xae   : > { %2550 = vst [vmem:[#allocation28_spill] sm:$0xff] %v1899_v24  ;;  %533 = vmatpush.msra.mxu0 %v504_v60  ;;  %1170 = vmatpush.msra.mxu3 %v504_v60 }
  0xaf   : > { %1186 = vmatpush.msra.mxu1 %v1894_v35  ;;  %1202 = vmatpush.msra.mxu2 %v1899_v24 }
  0xb0   : > { %v1315_v34 = vpop.permute.xlu0 %1314 }
  0xb1   : > { %v1317_v15 = vunpack.i.h.bf16 %v1315_v34  ;;  %v1316_v54 = vunpack.i.l.bf16 %v1315_v34 }
  0xb2   : > { %v1906_v39 = vpop.permute.xlu1 %1319 }
  0xb3   : > { %v2515_v43 = vunpack.i.h.bf16 %v1906_v39  ;;  %v1321_v25 = vunpack.i.l.bf16 %v1906_v39  ;;  %v254_v42 = vsel %vm253_vm0, %v1316_v54, %v1317_v15 }
  0xb4   : > { %v503_v24 = vsel %vm406_vm1, %v254_v42, %v1312_v17 }
  0xb5   : > { %v1912_v60 = vsel %vm406_vm1, %v1312_v17, %v1321_v25  ;;  %v1917_v59 = vsel %vm406_vm1, %v1321_v25, %v2515_v43  ;;  %534 = vmatpush.msra.mxu0 %v503_v24  ;;  %1171 = vmatpush.msra.mxu3 %v503_v24  ;;  %v1934_v17 = vpop.permute.xlu2 %1339  ;;  %v1983_v25 = vld [vmem:[%s1966_s29 + $0x20] sm:$0xff]  ;;  %v2551_v43 = vunpack.i.l.bf16 %v1794_v52  ;;  %v2554_v52 = vunpack.i.h.bf16 %v1792_v33 }
  0xb6   : > { %1187 = vmatpush.msra.mxu1 %v1912_v60  ;;  %1203 = vmatpush.msra.mxu2 %v1917_v59  ;;  %v2557_v33 = vunpack.i.l.bf16 %v1825_v16  ;;  %v2558_v16 = vunpack.i.h.bf16 %v1842_v26 }
  0xb7   : > { %535 = vmatpush.msra.mxu0 %v1456_v9  ;;  %1172 = vmatpush.msra.mxu3 %v1456_v9  ;;  %v2516_v9 = vunpack.i.h.bf16 %v1934_v17 }
  0xb8   : > { %1188 = vmatpush.msra.mxu1 %v1463_v10  ;;  %1204 = vmatpush.msra.mxu2 %v1446_v6  ;;  %v1928_v34 = vpop.permute.xlu0 %1329 }
  0xb9   : > { %536 = vmatpush.msra.mxu0 %v1441_v5  ;;  %1173 = vmatpush.msra.mxu3 %v1441_v5  ;;  %v1327_v5 = vunpack.i.h.bf16 %v1904_v30  ;;  %v1332_v54 = vunpack.i.h.bf16 %v1928_v34 }
  0xba   : > { %v1930_v42 = vpop.permute.xlu1 %1334  ;;  %1189 = vmatpush.msra.mxu1 %v1429_v2  ;;  %1205 = vmatpush.msra.mxu2 %v1436_v4 }
  0xbb   : > { %537 = vmatpush.msra.mxu0 %v1495_v18  ;;  %1174 = vmatpush.msra.mxu3 %v1495_v18 }
  0xbc   : > { %1190 = vmatpush.msra.mxu1 %v1502_v19  ;;  %1206 = vmatpush.msra.mxu2 %v1522_v23 }
  0xbd   : > { %538 = vmatpush.msra.mxu0 %v1517_v22  ;;  %1175 = vmatpush.msra.mxu3 %v1517_v22  ;;  %v2518_v22 = vunpack.i.l.bf16 %v1904_v30 }
  0xbe   : > { %1191 = vmatpush.msra.mxu1 %v1534_v27  ;;  %1207 = vmatpush.msra.mxu2 %v1541_v28 }
  0xbf   : > { %539 = vmatpush.msra.mxu0 %v1556_v31  ;;  %1176 = vmatpush.msra.mxu3 %v1556_v31  ;;  %v1971_v31 = vpop.permute.xlu2 %1354  ;;  %v444_v15 = vsel %vm406_vm1, %v2551_v43, %v2518_v22 }
  0xc0   : > { %1192 = vmatpush.msra.mxu1 %v1561_v32  ;;  %1208 = vmatpush.msra.mxu2 %v1585_v38  ;;  %v1955_v18 = vpop.permute.xlu0 %1344  ;;  %v2555_v22 = vunpack.i.h.bf16 %v1971_v31 }
  0xc1   : > { %540 = vmatpush.msra.mxu0 %v1580_v37  ;;  %1177 = vmatpush.msra.mxu3 %v1580_v37  ;;  %v446_v37 = vsel %vm406_vm1, %v2516_v9, %v1327_v5  ;;  %v2520_v9 = vunpack.i.l.bf16 %v1934_v17 }
  0xc2   : > { %v1957_v24 = vpop.permute.xlu1 %1349  ;;  %1193 = vmatpush.msra.mxu1 %v1595_v40  ;;  %1209 = vmatpush.msra.mxu2 %v1600_v41 }
  0xc3   : > { %541 = vmatpush.msra.mxu0 %v1624_v47  ;;  %1178 = vmatpush.msra.mxu3 %v1624_v47  ;;  %v1337_v47 = vunpack.i.h.bf16 %v1930_v42 }
  0xc4   : > { %1194 = vmatpush.msra.mxu1 %v1629_v48  ;;  %1210 = vmatpush.msra.mxu2 %v1639_v50  ;;  %v2018_v50 = vld [vmem:[%s1966_s29] sm:$0xff] }
  0xc5   : > { %542 = vmatpush.msra.mxu0 %v1634_v49  ;;  %1179 = vmatpush.msra.mxu3 %v1634_v49  ;;  %v2552_v49 = vunpack.i.l.bf16 %v1957_v24 }
  0xc6   : > { %1195 = vmatpush.msra.mxu1 %v1663_v56  ;;  %1211 = vmatpush.msra.mxu2 %v1668_v57 }
  0xc7   : > { %555 = vmatmul.f32.vlgmr.msra.gmra.mxu3 %v1983_v25  ;;  %592 = vmatpush.msrb.mxu0 %v1803_v51  ;;  %v2553_v51 = vunpack.i.l.bf16 %v1928_v34 }
  0xc8   : > { %852 = vmatpush.msrb.mxu1 %v446_v37  ;;  %917 = vmatpush.msrb.mxu2 %v1327_v5  ;;  %v1998_v57 = vpop.permute.xlu0 %1359  ;;  %v441_v37 = vsel %vm406_vm1, %v2552_v49, %v1332_v54  ;;  %v436_v49 = vsel %vm406_vm1, %v2555_v22, %v1337_v47  ;;  %v2029_v22 = vld [vmem:[%s1966_s29 + $0x28] sm:$0xff] }
  0xc9   : > { %685 = vmatmul.f32.vlgmr.msra.gmra.mxu2 %v1983_v25  ;;  %722 = vmatpush.msrb.mxu3 %v444_v15  ;;  %v439_v43 = vsel %vm406_vm1, %v2554_v52, %v2553_v51  ;;  %v2521_v52 = vunpack.i.h.bf16 %v1955_v18 }
  0xca   : > { %v2004_v5 = vpop.permute.xlu1 %1364  ;;  %918 = vmatpush.msrb.mxu2 %v1332_v54  ;;  %593 = vmatpush.msrb.mxu0 %v1815_v53  ;;  %v1346_v54 = vunpack.i.l.bf16 %v1955_v18  ;;  %v2556_v53 = vunpack.i.l.bf16 %v1930_v42 }
  0xcb   : > { %v1366_v15 = vunpack.i.l.bf16 %v2004_v5  ;;  %723 = vmatpush.msrb.mxu3 %v439_v43  ;;  %853 = vmatpush.msrb.mxu1 %v441_v37  ;;  %v1352_v37 = vunpack.i.h.bf16 %v1957_v24  ;;  %v2032_v43 = vpop.permute.xlu2 %1369 }
  0xcc   : > { %919 = vmatpush.msrb.mxu2 %v1337_v47  ;;  %594 = vmatpush.msrb.mxu0 %v1832_v8  ;;  %v434_v51 = vsel %vm406_vm1, %v2557_v33, %v2556_v53  ;;  %v429_v8 = vsel %vm406_vm1, %v2558_v16, %v2520_v9  ;;  %v1356_v47 = vunpack.i.l.bf16 %v1971_v31  ;;  %v1362_v33 = vunpack.i.h.bf16 %v1998_v57 }
  0xcd   : > { %724 = vmatpush.msrb.mxu3 %v434_v51  ;;  %854 = vmatpush.msrb.mxu1 %v436_v49  ;;  %v2522_v49 = vunpack.i.h.bf16 %v2032_v43  ;;  %v431_v53 = vsel %vm406_vm1, %v1366_v15, %v1346_v54 }
  0xce   : > { %543 = vmatmul.f32.vlgmr.msra.gmra.mxu0 %v2018_v50  ;;  %620 = vmatmul.f32.vlgmr.msra.gmra.mxu1 %v1983_v25 }
  0xcf   : > { %595 = vmatpush.msrb.mxu0 %v1847_v55  ;;  %725 = vmatpush.msrb.mxu3 %v429_v8  ;;  %v2559_v55 = vunpack.i.l.bf16 %v1866_v7  ;;  %v426_v16 = vsel %vm406_vm1, %v2522_v49, %v1352_v37  ;;  %v2560_v7 = vunpack.i.h.bf16 %v1854_v44  ;;  %v1367_v49 = vunpack.i.h.bf16 %v2004_v5  ;;  %v2257_v5 = vld [vmem:[%s1966_s29 + $0x70] sm:$0xff] }
  0xd0   : > { %558 = vmatmul.f32.gmra.mxu3 %v2029_v22  ;;  %920 = vmatpush.msrb.mxu2 %v1346_v54  ;;  %v2049_v26 = vpop.permute.xlu0 %1374  ;;  %v1361_v54 = vunpack.i.l.bf16 %v1998_v57  ;;  %v2592_v57 = vld [vmem:[#allocation14_spill] sm:$0xff] }
  0xd1   : > { %596 = vmatpush.msrb.mxu0 %v1860_v36  ;;  %688 = vmatmul.f32.gmra.mxu2 %v2029_v22  ;;  %v424_v51 = vsel %vm406_vm1, %v2559_v55, %v2521_v52  ;;  %v1377_v8 = vunpack.i.h.bf16 %v2049_v26  ;;  %v1371_v36 = vunpack.i.l.bf16 %v2032_v43  ;;  %v419_v55 = vsel %vm406_vm1, %v2560_v7, %v1356_v47  ;;  %v2073_v52 = vld [vmem:[%s1966_s29 + $0x8] sm:$0xff] }
  0xd2   : > { %726 = vmatpush.msrb.mxu3 %v424_v51  ;;  %855 = vmatpush.msrb.mxu1 %v431_v53  ;;  %v2063_v9 = vpop.permute.xlu1 %1379  ;;  %v2561_v53 = vunpack.i.l.bf16 %v1887_v46  ;;  %v2090_v46 = vld [vmem:[%s1966_s29 + $0x30] sm:$0xff] }
  0xd3   : > { %597 = vmatpush.msrb.mxu0 %v1871_v29  ;;  %921 = vmatpush.msrb.mxu2 %v1352_v37  ;;  %v1376_v29 = vunpack.i.l.bf16 %v2049_v26  ;;  %v1382_v44 = vunpack.i.h.bf16 %v2063_v9  ;;  %v1381_v37 = vunpack.i.l.bf16 %v2063_v9  ;;  %v421_v7 = vsel %vm406_vm1, %v1377_v8, %v1361_v54  ;;  %v2593_v9 = vld [vmem:[#allocation16_spill] sm:$0xff]  ;;  %v2596_v26 = vld [vmem:[#allocation21_spill] sm:$0xff] }
  0xd4   : > { %727 = vmatpush.msrb.mxu3 %v419_v55  ;;  %v414_v51 = vsel %vm406_vm1, %v2561_v53, %v1362_v33  ;;  %856 = vmatpush.msrb.mxu1 %v426_v16  ;;  %v2582_v55 = vld [vmem:[#allocation6_spill] sm:$0xff]  ;;  %v2583_v53 = vld [vmem:[#allocation28_spill] sm:$0xff] }
  0xd5   : > { %598 = vmatpush.msrb.mxu0 %v1894_v35  ;;  %922 = vmatpush.msrb.mxu2 %v1361_v54  ;;  %v2562_v35 = vunpack.i.h.bf16 %v1906_v39  ;;  %v416_v54 = vsel %vm406_vm1, %v1381_v37, %v1367_v49  ;;  %v2110_v39 = vld [vmem:[%s1966_s29 + $0x10] sm:$0xff] }
  0xd6   : > { %728 = vmatpush.msrb.mxu3 %v414_v51  ;;  %546 = vmatmul.f32.gmra.mxu0 %v2073_v52  ;;  %v2584_v51 = vld [vmem:[#allocation10_spill] sm:$0xff] }
  0xd7   : > { %599 = vmatpush.msrb.mxu0 %v1912_v60  ;;  %623 = vmatmul.f32.gmra.mxu1 %v2029_v22  ;;  %v409_v16 = vsel %vm406_vm1, %v2562_v35, %v1371_v36  ;;  %v411_v60 = vsel %vm406_vm1, %v1382_v44, %v1376_v29  ;;  %v2590_v35 = vunpack.i.h.bf16 %v1955_v18  ;;  %v415_v18 = vsel %vm406_vm1, %v1362_v33, %v1381_v37  ;;  %v2595_v33 = vld [vmem:[#allocation20_spill] sm:$0xff] }
  0xd8   : > { %729 = vmatpush.msrb.mxu3 %v409_v16  ;;  %857 = vmatpush.msrb.mxu1 %v421_v7  ;;  %v2194_v7 = vld [vmem:[%s1966_s29 + $0x50] sm:$0xff] }
  0xd9   : > { %561 = vmatmul.f32.gmra.mxu3 %v2090_v46  ;;  %600 = vmatpush.msrb.mxu0 %v1463_v10  ;;  %v2116_v10 = vld [vmem:[%s1966_s29 + $0x38] sm:$0xff] }
  0xda   : > { %691 = vmatmul.f32.gmra.mxu2 %v2090_v46  ;;  %858 = vmatpush.msrb.mxu1 %v416_v54 }
  0xdb   : > { %601 = vmatpush.msrb.mxu0 %v1429_v2  ;;  %923 = vmatpush.msrb.mxu2 %v1367_v49  ;;  %v2563_v2 = vunpack.i.h.bf16 %v1934_v17  ;;  %v2581_v49 = vld [vmem:[#allocation19_spill] sm:$0xff] }
  0xdc   : > { %859 = vmatpush.msrb.mxu1 %v411_v60  ;;  %730 = vmatpush.msrb.mxu3 %v1673_v58 }
  0xdd   : > { %602 = vmatpush.msrb.mxu0 %v1502_v19  ;;  %924 = vmatpush.msrb.mxu2 %v1376_v29  ;;  %v2564_v19 = vunpack.i.l.bf16 %v1904_v30  ;;  %v2568_v30 = vunpack.i.l.bf16 %v1930_v42  ;;  %v2579_v42 = vld [vmem:[#allocation17_spill] sm:$0xff] }
  0xde   : > { %549 = vmatmul.f32.gmra.mxu0 %v2110_v39  ;;  %731 = vmatpush.msrb.mxu3 %v1687_v62  ;;  %v2566_v62 = vunpack.i.l.bf16 %v1928_v34  ;;  %v2585_v29 = vld [vmem:[#allocation9_spill] sm:$0xff] }
  0xdf   : > { %603 = vmatpush.msrb.mxu0 %v1534_v27  ;;  %626 = vmatmul.f32.gmra.mxu1 %v2090_v46  ;;  %v2128_v58 = vsel %vm406_vm1, %v2564_v19, %v2563_v2  ;;  %v2565_v27 = vunpack.i.l.bf16 %v1957_v24  ;;  %v2580_v24 = vld [vmem:[#allocation7_spill] sm:$0xff] }
  0xe0   : > { %925 = vmatpush.msrb.mxu2 %v1424_v1  ;;  %860 = vmatpush.msrb.mxu1 %v1419_v0  ;;  %v2143_v0 = vld [vmem:[%s1966_s29 + $0x18] sm:$0xff] }
  0xe1   : > { %564 = vmatmul.f32.gmra.mxu3 %v2116_v10  ;;  %604 = vmatpush.msrb.mxu0 %v1561_v32  ;;  %v2137_v1 = vsel %vm406_vm1, %v2566_v62, %v2565_v27  ;;  %v2567_v32 = vunpack.i.h.bf16 %v1971_v31  ;;  %v410_v31 = vsel %vm406_vm1, %v1371_v36, %v1382_v44  ;;  %v2598_v36 = vld [vmem:[#allocation22_spill] sm:$0xff] }
  0xe2   : > { %694 = vmatmul.f32.gmra.mxu2 %v2116_v10  ;;  %732 = vmatpush.msrb.mxu3 %v1692_v63  ;;  %v2176_v63 = vld [vmem:[%s1966_s29 + $0x48] sm:$0xff] }
  0xe3   : > { %605 = vmatpush.msrb.mxu0 %v1595_v40  ;;  %926 = vmatpush.msrb.mxu2 %v1473_v12  ;;  %v435_v34 = vsel %vm406_vm1, %v2568_v30, %v2567_v32  ;;  %v2157_v40 = vld [vmem:[%s1966_s29 + $0x40] sm:$0xff]  ;;  %v2570_v12 = vld [vmem:[#allocation13_spill] sm:$0xff] }
  0xe4   : > { %861 = vmatpush.msrb.mxu1 %v1468_v11  ;;  %733 = vmatpush.msrb.mxu3 %v1697_v3  ;;  %v2569_v11 = vld [vmem:[#allocation24_spill] sm:$0xff]  ;;  %v2578_v3 = vld [vmem:[#allocation27_spill] sm:$0xff] }
  0xe5   : > { %606 = vmatpush.msrb.mxu0 %v1629_v48  ;;  %927 = vmatpush.msrb.mxu2 %v1483_v14  ;;  %v2572_v14 = vld [vmem:[#allocation25_spill] sm:$0xff]  ;;  %v2573_v48 = vld [vmem:[#allocation2_spill] sm:$0xff] }
  0xe6   : > { %552 = vmatmul.f32.gmra.mxu0 %v2143_v0  ;;  %862 = vmatpush.msrb.mxu1 %v1478_v13  ;;  %v2571_v13 = vld [vmem:[#allocation3_spill] sm:$0xff] }
  0xe7   : > { %607 = vmatpush.msrb.mxu0 %v1663_v56  ;;  %629 = vmatmul.f32.gmra.mxu1 %v2116_v10  ;;  %v2574_v56 = vld [vmem:[#allocation15_spill] sm:$0xff] }
  0xe8   : > { %928 = vmatpush.msrb.mxu2 %v1512_v21  ;;  %863 = vmatpush.msrb.mxu1 %v1507_v20  ;;  %v2576_v21 = vld [vmem:[#allocation26_spill] sm:$0xff]  ;;  %v2577_v20 = vld [vmem:[#allocation4_spill] sm:$0xff] }
  0xe9   : > { %657 = vmatpush.msra.mxu0 %v1808_v45  ;;  %567 = vmatmul.f32.gmra.mxu3 %v2157_v40  ;;  %v2575_v45 = vld [vmem:[#allocation5_spill] sm:$0xff] }
  0xea   : > { %697 = vmatmul.f32.gmra.mxu2 %v2157_v40  ;;  %734 = vmatpush.msrb.mxu3 %v2570_v12 }
  0xeb   : > { %658 = vmatpush.msra.mxu0 %v2569_v11  ;;  %929 = vmatpush.msrb.mxu2 %v2571_v13 }
  0xec   : > { %864 = vmatpush.msrb.mxu1 %v2573_v48  ;;  %735 = vmatpush.msrb.mxu3 %v2574_v56 }
  0xed   : > { %659 = vmatpush.msra.mxu0 %v2572_v14  ;;  %930 = vmatpush.msrb.mxu2 %v2575_v45 }
  0xee   : > { %865 = vmatpush.msrb.mxu1 %v2577_v20  ;;  %608 = vmatmul.f32.vlgmr.msrb.gmra.mxu0 %v2018_v50 }
  0xef   : > { %660 = vmatpush.msra.mxu0 %v2576_v21  ;;  %632 = vmatmul.f32.gmra.mxu1 %v2157_v40 }
  0xf0   : > { %736 = vmatpush.msrb.mxu3 %v2579_v42  ;;  %931 = vmatpush.msrb.mxu2 %v2580_v24 }
  0xf1   : > { %661 = vmatpush.msra.mxu0 %v2578_v3  ;;  %570 = vmatmul.f32.gmra.mxu3 %v2176_v63 }
  0xf2   : > { %700 = vmatmul.f32.gmra.mxu2 %v2176_v63  ;;  %737 = vmatpush.msrb.mxu3 %v2581_v49 }
  0xf3   : > { %662 = vmatpush.msra.mxu0 %v1884_v61  ;;  %866 = vmatpush.msrb.mxu1 %v2582_v55  ;;  %v2589_v61 = vunpack.i.h.bf16 %v2032_v43  ;;  %v2267_v43 = vld [vmem:[%s1966_s29 + $0x78] sm:$0xff] }
  0xf4   : > { %932 = vmatpush.msrb.mxu2 %v2584_v51 }
  0xf5   : > { %663 = vmatpush.msra.mxu0 %v2583_v53  ;;  %867 = vmatpush.msrb.mxu1 %v2585_v29  ;;  %v425_v16 = vsel %vm406_vm1, %v2590_v35, %v2589_v61 }
  0xf6   : > { %611 = vmatmul.f32.gmra.mxu0 %v2073_v52 }
  0xf7   : > { %664 = vmatpush.msra.mxu0 %v1917_v59  ;;  %635 = vmatmul.f32.gmra.mxu1 %v2176_v63  ;;  %v2205_v59 = vld [vmem:[%s1966_s29 + $0x58] sm:$0xff] }
  0xf9   : > { %665 = vmatpush.msra.mxu0 %v1446_v6  ;;  %573 = vmatmul.f32.gmra.mxu3 %v2194_v7  ;;  %v2587_v6 = vld [vmem:[#allocation11_spill] sm:$0xff] }
  0xfa   : > { %703 = vmatmul.f32.gmra.mxu2 %v2194_v7 }
  0xfb   : > { %666 = vmatpush.msra.mxu0 %v1436_v4  ;;  %v2586_v4 = vld [vmem:[#allocation8_spill] sm:$0xff] }
  0xfd   : > { %667 = vmatpush.msra.mxu0 %v1522_v23  ;;  %v2216_v23 = vld [vmem:[%s1966_s29 + $0x60] sm:$0xff] }
  0xfe   : > { %614 = vmatmul.f32.gmra.mxu0 %v2110_v39 }
  0xff   : > { %668 = vmatpush.msra.mxu0 %v1541_v28  ;;  %638 = vmatmul.f32.gmra.mxu1 %v2194_v7  ;;  %v2588_v28 = vunpack.i.l.bf16 %v1934_v17  ;;  %v420_v17 = vsel %vm406_vm1, %v1356_v47, %v1377_v8  ;;  %v2594_v47 = vld [vmem:[#allocation18_spill] sm:$0xff]  ;;  %v2597_v8 = vld [vmem:[#allocation23_spill] sm:$0xff] }
 0x101   : > { %669 = vmatpush.msra.mxu0 %v1585_v38  ;;  %576 = vmatmul.f32.gmra.mxu3 %v2205_v59  ;;  %v430_v38 = vsel %vm406_vm1, %v2588_v28, %v1366_v15  ;;  %v2591_v15 = vld [vmem:[#allocation12_spill] sm:$0xff] }
 0x102   : > { %706 = vmatmul.f32.gmra.mxu2 %v2205_v59 }
 0x103   : > { %670 = vmatpush.msra.mxu0 %v1600_v41  ;;  %v2230_v41 = vld [vmem:[%s1966_s29 + $0x68] sm:$0xff] }
 0x105   : > { %671 = vmatpush.msra.mxu0 %v2586_v4 }
 0x106   : > { %617 = vmatmul.f32.gmra.mxu0 %v2143_v0 }
 0x107   : > { %672 = vmatpush.msra.mxu0 %v2587_v6  ;;  %641 = vmatmul.f32.gmra.mxu1 %v2205_v59 }
 0x109   : > { %787 = vmatpush.msrb.mxu0 %v2128_v58  ;;  %579 = vmatmul.f32.gmra.mxu3 %v2216_v23 }
 0x10a   : > { %709 = vmatmul.f32.gmra.mxu2 %v2216_v23 }
 0x10b   : > { %788 = vmatpush.msrb.mxu0 %v2137_v1 }
 0x10d   : > { %789 = vmatpush.msrb.mxu0 %v435_v34 }
 0x10e   : > { %673 = vmatmul.f32.vlgmr.msra.gmra.mxu0 %v2018_v50 }
 0x10f   : > { %790 = vmatpush.msrb.mxu0 %v430_v38  ;;  %644 = vmatmul.f32.gmra.mxu1 %v2216_v23 }
 0x111   : > { %791 = vmatpush.msrb.mxu0 %v425_v16  ;;  %582 = vmatmul.f32.gmra.mxu3 %v2230_v41 }
 0x112   : > { %712 = vmatmul.f32.gmra.mxu2 %v2230_v41 }
 0x113   : > { %792 = vmatpush.msrb.mxu0 %v420_v17 }
 0x115   : > { %793 = vmatpush.msrb.mxu0 %v415_v18 }
 0x116   : > { %676 = vmatmul.f32.gmra.mxu0 %v2073_v52 }
 0x117   : > { %794 = vmatpush.msrb.mxu0 %v410_v31  ;;  %647 = vmatmul.f32.gmra.mxu1 %v2230_v41 }
 0x119   : > { %795 = vmatpush.msrb.mxu0 %v2591_v15  ;;  %585 = vmatmul.f32.gmra.mxu3 %v2257_v5 }
 0x11a   : > { %715 = vmatmul.f32.gmra.mxu2 %v2257_v5 }
 0x11b   : > { %796 = vmatpush.msrb.mxu0 %v2592_v57 }
 0x11d   : > { %797 = vmatpush.msrb.mxu0 %v2593_v9 }
 0x11e   : > { %679 = vmatmul.f32.gmra.mxu0 %v2110_v39 }
 0x11f   : > { %798 = vmatpush.msrb.mxu0 %v2594_v47  ;;  %650 = vmatmul.f32.gmra.mxu1 %v2257_v5 }
 0x121   : > { %799 = vmatpush.msrb.mxu0 %v2595_v33  ;;  %588 = vmatmul.f32.gmra.mxu3 %v2267_v43 }
 0x122   : > { %718 = vmatmul.f32.gmra.mxu2 %v2267_v43 }
 0x123   : > { %800 = vmatpush.msrb.mxu0 %v2596_v26 }
 0x125   : > { %801 = vmatpush.msrb.mxu0 %v2597_v8 }
 0x126   : > { %682 = vmatmul.f32.gmra.mxu0 %v2143_v0 }
 0x127   : > { %802 = vmatpush.msrb.mxu0 %v2598_v36  ;;  %653 = vmatmul.f32.gmra.mxu1 %v2267_v43 }
 0x129   : > { %738 = vmatmul.f32.vlgmr.msrb.gmra.mxu3 %v2018_v50 }
 0x12a   : > { %933 = vmatmul.f32.vlgmr.msrb.gmra.mxu2 %v2018_v50 }
 0x12e   : > { %803 = vmatmul.f32.vlgmr.msrb.gmra.mxu0 %v2018_v50 }
 0x12f   : > { %868 = vmatmul.f32.vlgmr.msrb.gmra.mxu1 %v2018_v50 }
 0x131   : > { %741 = vmatmul.f32.gmra.mxu3 %v2073_v52 }
 0x132   : > { %936 = vmatmul.f32.gmra.mxu2 %v2073_v52 }
 0x136   : > { %806 = vmatmul.f32.gmra.mxu0 %v2073_v52 }
 0x137   : > { %871 = vmatmul.f32.gmra.mxu1 %v2073_v52 }
 0x139   : > { %744 = vmatmul.f32.gmra.mxu3 %v2110_v39 }
 0x13a   : > { %939 = vmatmul.f32.gmra.mxu2 %v2110_v39 }
 0x13e   : > { %809 = vmatmul.f32.gmra.mxu0 %v2110_v39 }
 0x13f   : > { %874 = vmatmul.f32.gmra.mxu1 %v2110_v39 }
 0x141   : > { %747 = vmatmul.f32.gmra.mxu3 %v2143_v0 }
 0x142   : > { %942 = vmatmul.f32.gmra.mxu2 %v2143_v0 }
 0x146   : > { %812 = vmatmul.f32.gmra.mxu0 %v2143_v0 }
 0x147   : > { %877 = vmatmul.f32.gmra.mxu1 %v2143_v0 }
 0x149   : > { %750 = vmatmul.f32.gmra.mxu3 %v1983_v25 }
 0x14a   : > { %945 = vmatmul.f32.gmra.mxu2 %v1983_v25  ;;  %v556_v52 = vpop.f32.mrf.mxu3 }
 0x14b   : > { %v544_v50 = vpop.f32.mrf.mxu0  ;;  %v621_v44 = vpop.f32.mrf.mxu1  ;;  %1011 = vst [vmem:[%s2300_s5 + $0xe0] sm:$0xff] %v556_v52 }
 0x14c   : > { %982 = vst [vmem:[%s2300_s5] sm:$0xff] %v544_v50  ;;  %v686_v37 = vpop.f32.mrf.mxu2 }
 0x14d   : > { %1012 = vst [vmem:[%s2300_s5 + $0xe8] sm:$0xff] %v621_v44 }
 0x14e   : > { %1013 = vst [vmem:[%s2300_s5 + $0xf0] sm:$0xff] %v686_v37  ;;  %815 = vmatmul.f32.gmra.mxu0 %v1983_v25 }
 0x14f   : > { %880 = vmatmul.f32.gmra.mxu1 %v1983_v25 }
 0x151   : > { %753 = vmatmul.f32.gmra.mxu3 %v2029_v22 }
 0x152   : > { %948 = vmatmul.f32.gmra.mxu2 %v2029_v22 }
 0x153   : > { %v547_v54 = vpop.f32.mrf.mxu0  ;;  %v559_v60 = vpop.f32.mrf.mxu3 }
 0x154   : > { %990 = vst [vmem:[%s2300_s5 + $0x38] sm:$0xff] %v547_v54  ;;  %v624_v39 = vpop.f32.mrf.mxu1  ;;  %v689_v2 = vpop.f32.mrf.mxu2 }
 0x155   : > { %1018 = vst [vmem:[%s2300_s5 + $0x118] sm:$0xff] %v559_v60 }
 0x156   : > { %1019 = vst [vmem:[%s2300_s5 + $0x120] sm:$0xff] %v624_v39  ;;  %818 = vmatmul.f32.gmra.mxu0 %v2029_v22 }
 0x157   : > { %1020 = vst [vmem:[%s2300_s5 + $0x128] sm:$0xff] %v689_v2  ;;  %883 = vmatmul.f32.gmra.mxu1 %v2029_v22 }
 0x159   : > { %756 = vmatmul.f32.gmra.mxu3 %v2090_v46 }
 0x15a   : > { %951 = vmatmul.f32.gmra.mxu2 %v2090_v46 }
 0x15b   : > { %v550_v25 = vpop.f32.mrf.mxu0 }
 0x15c   : > { %997 = vst [vmem:[%s2300_s5 + $0x70] sm:$0xff] %v550_v25  ;;  %v562_v19 = vpop.f32.mrf.mxu3  ;;  %v627_v58 = vpop.f32.mrf.mxu1 }
 0x15d   : > { %1025 = vst [vmem:[%s2300_s5 + $0x150] sm:$0xff] %v562_v19  ;;  %v692_v27 = vpop.f32.mrf.mxu2 }
 0x15e   : > { %1026 = vst [vmem:[%s2300_s5 + $0x158] sm:$0xff] %v627_v58  ;;  %821 = vmatmul.f32.gmra.mxu0 %v2090_v46 }
 0x15f   : > { %1027 = vst [vmem:[%s2300_s5 + $0x160] sm:$0xff] %v692_v27  ;;  %886 = vmatmul.f32.gmra.mxu1 %v2090_v46 }
 0x161   : > { %759 = vmatmul.f32.gmra.mxu3 %v2116_v10 }
 0x162   : > { %954 = vmatmul.f32.gmra.mxu2 %v2116_v10 }
 0x163   : > { %v553_v22 = vpop.f32.mrf.mxu0 }
 0x164   : > { %1004 = vst [vmem:[%s2300_s5 + $0xa8] sm:$0xff] %v553_v22  ;;  %v565_v62 = vpop.f32.mrf.mxu3  ;;  %v630_v1 = vpop.f32.mrf.mxu1 }
 0x165   : > { %1032 = vst [vmem:[%s2300_s5 + $0x188] sm:$0xff] %v565_v62  ;;  %v695_v0 = vpop.f32.mrf.mxu2 }
 0x166   : > { %1033 = vst [vmem:[%s2300_s5 + $0x190] sm:$0xff] %v630_v1  ;;  %824 = vmatmul.f32.gmra.mxu0 %v2116_v10 }
 0x167   : > { %1034 = vst [vmem:[%s2300_s5 + $0x198] sm:$0xff] %v695_v0  ;;  %889 = vmatmul.f32.gmra.mxu1 %v2116_v10 }
 0x169   : > { %762 = vmatmul.f32.gmra.mxu3 %v2157_v40 }
 0x16a   : > { %957 = vmatmul.f32.gmra.mxu2 %v2157_v40 }
 0x16b   : > { %v609_v32 = vpop.f32.mrf.mxu0 }
 0x16c   : > { %v568_v46 = vpop.f32.mrf.mxu3  ;;  %v633_v30 = vpop.f32.mrf.mxu1  ;;  %983 = vst [vmem:[%s2300_s5 + $0x8] sm:$0xff] %v609_v32 }
 0x16d   : > { %1039 = vst [vmem:[%s2300_s5 + $0x1c0] sm:$0xff] %v568_v46  ;;  %v698_v34 = vpop.f32.mrf.mxu2 }
 0x16e   : > { %1040 = vst [vmem:[%s2300_s5 + $0x1c8] sm:$0xff] %v633_v30  ;;  %827 = vmatmul.f32.gmra.mxu0 %v2157_v40 }
 0x16f   : > { %892 = vmatmul.f32.gmra.mxu1 %v2157_v40  ;;  %1041 = vst [vmem:[%s2300_s5 + $0x1d0] sm:$0xff] %v698_v34 }
 0x171   : > { %765 = vmatmul.f32.gmra.mxu3 %v2176_v63 }
 0x172   : > { %960 = vmatmul.f32.gmra.mxu2 %v2176_v63 }
 0x173   : > { %v612_v11 = vpop.f32.mrf.mxu0 }
 0x174   : > { %v571_v10 = vpop.f32.mrf.mxu3  ;;  %v636_v12 = vpop.f32.mrf.mxu1  ;;  %991 = vst [vmem:[%s2300_s5 + $0x40] sm:$0xff] %v612_v11 }
 0x175   : > { %1046 = vst [vmem:[%s2300_s5 + $0x1f8] sm:$0xff] %v571_v10  ;;  %v701_v13 = vpop.f32.mrf.mxu2 }
 0x176   : > { %1047 = vst [vmem:[%s2300_s5 + $0x200] sm:$0xff] %v636_v12  ;;  %830 = vmatmul.f32.gmra.mxu0 %v2176_v63 }
 0x177   : > { %895 = vmatmul.f32.gmra.mxu1 %v2176_v63  ;;  %1048 = vst [vmem:[%s2300_s5 + $0x208] sm:$0xff] %v701_v13 }
 0x179   : > { %768 = vmatmul.f32.gmra.mxu3 %v2194_v7 }
 0x17a   : > { %963 = vmatmul.f32.gmra.mxu2 %v2194_v7 }
 0x17b   : > { %v615_v14 = vpop.f32.mrf.mxu0 }
 0x17c   : > { %v574_v40 = vpop.f32.mrf.mxu3  ;;  %v639_v48 = vpop.f32.mrf.mxu1  ;;  %998 = vst [vmem:[%s2300_s5 + $0x78] sm:$0xff] %v615_v14 }
 0x17d   : > { %1053 = vst [vmem:[%s2300_s5 + $0x230] sm:$0xff] %v574_v40  ;;  %v704_v56 = vpop.f32.mrf.mxu2 }
 0x17e   : > { %1054 = vst [vmem:[%s2300_s5 + $0x238] sm:$0xff] %v639_v48  ;;  %833 = vmatmul.f32.gmra.mxu0 %v2194_v7 }
 0x17f   : > { %898 = vmatmul.f32.gmra.mxu1 %v2194_v7  ;;  %1055 = vst [vmem:[%s2300_s5 + $0x240] sm:$0xff] %v704_v56 }
 0x181   : > { %771 = vmatmul.f32.gmra.mxu3 %v2205_v59 }
 0x182   : > { %966 = vmatmul.f32.gmra.mxu2 %v2205_v59 }
 0x183   : > { %v618_v21 = vpop.f32.mrf.mxu0 }
 0x184   : > { %v577_v45 = vpop.f32.mrf.mxu3  ;;  %v642_v63 = vpop.f32.mrf.mxu1  ;;  %1005 = vst [vmem:[%s2300_s5 + $0xb0] sm:$0xff] %v618_v21 }
 0x185   : > { %1060 = vst [vmem:[%s2300_s5 + $0x268] sm:$0xff] %v577_v45  ;;  %v707_v20 = vpop.f32.mrf.mxu2 }
 0x186   : > { %1061 = vst [vmem:[%s2300_s5 + $0x270] sm:$0xff] %v642_v63  ;;  %836 = vmatmul.f32.gmra.mxu0 %v2205_v59 }
 0x187   : > { %901 = vmatmul.f32.gmra.mxu1 %v2205_v59  ;;  %1062 = vst [vmem:[%s2300_s5 + $0x278] sm:$0xff] %v707_v20 }
 0x189   : > { %774 = vmatmul.f32.gmra.mxu3 %v2216_v23 }
 0x18a   : > { %969 = vmatmul.f32.gmra.mxu2 %v2216_v23 }
 0x18b   : > { %v674_v42 = vpop.f32.mrf.mxu0 }
 0x18c   : > { %v580_v3 = vpop.f32.mrf.mxu3  ;;  %v645_v24 = vpop.f32.mrf.mxu1  ;;  %984 = vst [vmem:[%s2300_s5 + $0x10] sm:$0xff] %v674_v42 }
 0x18d   : > { %1067 = vst [vmem:[%s2300_s5 + $0x2a0] sm:$0xff] %v580_v3  ;;  %v710_v49 = vpop.f32.mrf.mxu2 }
 0x18e   : > { %1068 = vst [vmem:[%s2300_s5 + $0x2a8] sm:$0xff] %v645_v24  ;;  %839 = vmatmul.f32.gmra.mxu0 %v2216_v23 }
 0x18f   : > { %904 = vmatmul.f32.gmra.mxu1 %v2216_v23  ;;  %1069 = vst [vmem:[%s2300_s5 + $0x2b0] sm:$0xff] %v710_v49 }
 0x191   : > { %777 = vmatmul.f32.gmra.mxu3 %v2230_v41 }
 0x192   : > { %972 = vmatmul.f32.gmra.mxu2 %v2230_v41 }
 0x193   : > { %v677_v53 = vpop.f32.mrf.mxu0 }
 0x194   : > { %v583_v55 = vpop.f32.mrf.mxu3  ;;  %v648_v51 = vpop.f32.mrf.mxu1  ;;  %992 = vst [vmem:[%s2300_s5 + $0x48] sm:$0xff] %v677_v53 }
 0x195   : > { %1074 = vst [vmem:[%s2300_s5 + $0x2d8] sm:$0xff] %v583_v55  ;;  %v713_v29 = vpop.f32.mrf.mxu2 }
 0x196   : > { %1075 = vst [vmem:[%s2300_s5 + $0x2e0] sm:$0xff] %v648_v51  ;;  %842 = vmatmul.f32.gmra.mxu0 %v2230_v41 }
 0x197   : > { %907 = vmatmul.f32.gmra.mxu1 %v2230_v41  ;;  %1076 = vst [vmem:[%s2300_s5 + $0x2e8] sm:$0xff] %v713_v29 }
 0x199   : > { %780 = vmatmul.f32.gmra.mxu3 %v2257_v5 }
 0x19a   : > { %975 = vmatmul.f32.gmra.mxu2 %v2257_v5 }
 0x19b   : > { %v680_v59 = vpop.f32.mrf.mxu0 }
 0x19c   : > { %v586_v7 = vpop.f32.mrf.mxu3  ;;  %v651_v4 = vpop.f32.mrf.mxu1  ;;  %999 = vst [vmem:[%s2300_s5 + $0x80] sm:$0xff] %v680_v59 }
 0x19d   : > { %1081 = vst [vmem:[%s2300_s5 + $0x310] sm:$0xff] %v586_v7  ;;  %v716_v6 = vpop.f32.mrf.mxu2 }
 0x19e   : > { %1082 = vst [vmem:[%s2300_s5 + $0x318] sm:$0xff] %v651_v4  ;;  %845 = vmatmul.f32.gmra.mxu0 %v2257_v5 }
 0x19f   : > { %910 = vmatmul.f32.gmra.mxu1 %v2257_v5  ;;  %1083 = vst [vmem:[%s2300_s5 + $0x320] sm:$0xff] %v716_v6 }
 0x1a1   : > { %783 = vmatmul.f32.gmra.mxu3 %v2267_v43 }
 0x1a2   : > { %978 = vmatmul.f32.gmra.mxu2 %v2267_v43 }
 0x1a3   : > { %v683_v28 = vpop.f32.mrf.mxu0 }
 0x1a4   : > { %v589_v23 = vpop.f32.mrf.mxu3  ;;  %v654_v38 = vpop.f32.mrf.mxu1  ;;  %1006 = vst [vmem:[%s2300_s5 + $0xb8] sm:$0xff] %v683_v28 }
 0x1a5   : > { %1088 = vst [vmem:[%s2300_s5 + $0x348] sm:$0xff] %v589_v23  ;;  %v719_v41 = vpop.f32.mrf.mxu2 }
 0x1a6   : > { %1089 = vst [vmem:[%s2300_s5 + $0x350] sm:$0xff] %v654_v38  ;;  %848 = vmatmul.f32.gmra.mxu0 %v2267_v43 }
 0x1a7   : > { %913 = vmatmul.f32.gmra.mxu1 %v2267_v43  ;;  %1090 = vst [vmem:[%s2300_s5 + $0x358] sm:$0xff] %v719_v41 }
 0x1ab   : > { %v804_v35 = vpop.f32.mrf.mxu0 }
 0x1ac   : > { %v739_v61 = vpop.f32.mrf.mxu3  ;;  %v869_v16 = vpop.f32.mrf.mxu1  ;;  %986 = vst [vmem:[%s2300_s5 + $0x20] sm:$0xff] %v804_v35 }
 0x1ad   : > { %985 = vst [vmem:[%s2300_s5 + $0x18] sm:$0xff] %v739_v61  ;;  %v934_v17 = vpop.f32.mrf.mxu2 }
 0x1ae   : > { %987 = vst [vmem:[%s2300_s5 + $0x28] sm:$0xff] %v869_v16 }
 0x1af   : > { %989 = vst.msk [vmem:[%s2300_s5 + $0x30] sm:$0xff] %vm988_vm2, %v934_v17 }
 0x1b3   : > { %v807_v31 = vpop.f32.mrf.mxu0 }
 0x1b4   : > { %v742_v18 = vpop.f32.mrf.mxu3  ;;  %v872_v5 = vpop.f32.mrf.mxu1  ;;  %994 = vst [vmem:[%s2300_s5 + $0x58] sm:$0xff] %v807_v31 }
 0x1b5   : > { %993 = vst [vmem:[%s2300_s5 + $0x50] sm:$0xff] %v742_v18  ;;  %v937_v15 = vpop.f32.mrf.mxu2 }
 0x1b6   : > { %995 = vst [vmem:[%s2300_s5 + $0x60] sm:$0xff] %v872_v5 }
 0x1b7   : > { %996 = vst.msk [vmem:[%s2300_s5 + $0x68] sm:$0xff] %vm988_vm2, %v937_v15 }
 0x1bb   : > { %v810_v9 = vpop.f32.mrf.mxu0 }
 0x1bc   : > { %v745_v57 = vpop.f32.mrf.mxu3  ;;  %v875_v43 = vpop.f32.mrf.mxu1  ;;  %1001 = vst [vmem:[%s2300_s5 + $0x90] sm:$0xff] %v810_v9 }
 0x1bd   : > { %1000 = vst [vmem:[%s2300_s5 + $0x88] sm:$0xff] %v745_v57  ;;  %v940_v47 = vpop.f32.mrf.mxu2 }
 0x1be   : > { %1002 = vst [vmem:[%s2300_s5 + $0x98] sm:$0xff] %v875_v43 }
 0x1bf   : > { %1003 = vst.msk [vmem:[%s2300_s5 + $0xa0] sm:$0xff] %vm988_vm2, %v940_v47 }
 0x1c3   : > { %v813_v26 = vpop.f32.mrf.mxu0 }
 0x1c4   : > { %v748_v33 = vpop.f32.mrf.mxu3  ;;  %v878_v8 = vpop.f32.mrf.mxu1  ;;  %1008 = vst [vmem:[%s2300_s5 + $0xc8] sm:$0xff] %v813_v26 }
 0x1c5   : > { %1007 = vst [vmem:[%s2300_s5 + $0xc0] sm:$0xff] %v748_v33  ;;  %v943_v36 = vpop.f32.mrf.mxu2 }
 0x1c6   : > { %1009 = vst [vmem:[%s2300_s5 + $0xd0] sm:$0xff] %v878_v8 }
 0x1c7   : > { %1010 = vst.msk [vmem:[%s2300_s5 + $0xd8] sm:$0xff] %vm988_vm2, %v943_v36 }
 0x1cb   : > { %v816_v52 = vpop.f32.mrf.mxu0 }
 0x1cc   : > { %v751_v50 = vpop.f32.mrf.mxu3  ;;  %v881_v44 = vpop.f32.mrf.mxu1  ;;  %1015 = vst [vmem:[%s2300_s5 + $0x100] sm:$0xff] %v816_v52 }
 0x1cd   : > { %1014 = vst [vmem:[%s2300_s5 + $0xf8] sm:$0xff] %v751_v50  ;;  %v946_v37 = vpop.f32.mrf.mxu2 }
 0x1ce   : > { %1016 = vst [vmem:[%s2300_s5 + $0x108] sm:$0xff] %v881_v44 }
 0x1cf   : > { %1017 = vst.msk [vmem:[%s2300_s5 + $0x110] sm:$0xff] %vm988_vm2, %v946_v37 }
 0x1d3   : > { %v819_v60 = vpop.f32.mrf.mxu0 }
 0x1d4   : > { %v754_v54 = vpop.f32.mrf.mxu3  ;;  %v884_v39 = vpop.f32.mrf.mxu1  ;;  %1022 = vst [vmem:[%s2300_s5 + $0x138] sm:$0xff] %v819_v60 }
 0x1d5   : > { %1021 = vst [vmem:[%s2300_s5 + $0x130] sm:$0xff] %v754_v54  ;;  %v949_v2 = vpop.f32.mrf.mxu2 }
 0x1d6   : > { %1023 = vst [vmem:[%s2300_s5 + $0x140] sm:$0xff] %v884_v39 }
 0x1d7   : > { %1024 = vst.msk [vmem:[%s2300_s5 + $0x148] sm:$0xff] %vm988_vm2, %v949_v2 }
 0x1db   : > { %v822_v19 = vpop.f32.mrf.mxu0 }
 0x1dc   : > { %v757_v25 = vpop.f32.mrf.mxu3  ;;  %v887_v58 = vpop.f32.mrf.mxu1  ;;  %1029 = vst [vmem:[%s2300_s5 + $0x170] sm:$0xff] %v822_v19 }
 0x1dd   : > { %1028 = vst [vmem:[%s2300_s5 + $0x168] sm:$0xff] %v757_v25  ;;  %v952_v27 = vpop.f32.mrf.mxu2 }
 0x1de   : > { %1030 = vst [vmem:[%s2300_s5 + $0x178] sm:$0xff] %v887_v58 }
 0x1df   : > { %1031 = vst.msk [vmem:[%s2300_s5 + $0x180] sm:$0xff] %vm988_vm2, %v952_v27 }
 0x1e3   : > { %v825_v62 = vpop.f32.mrf.mxu0 }
 0x1e4   : > { %v760_v22 = vpop.f32.mrf.mxu3  ;;  %v890_v1 = vpop.f32.mrf.mxu1  ;;  %1036 = vst [vmem:[%s2300_s5 + $0x1a8] sm:$0xff] %v825_v62 }
 0x1e5   : > { %1035 = vst [vmem:[%s2300_s5 + $0x1a0] sm:$0xff] %v760_v22  ;;  %v955_v0 = vpop.f32.mrf.mxu2 }
 0x1e6   : > { %1037 = vst [vmem:[%s2300_s5 + $0x1b0] sm:$0xff] %v890_v1 }
 0x1e7   : > { %1038 = vst.msk [vmem:[%s2300_s5 + $0x1b8] sm:$0xff] %vm988_vm2, %v955_v0 }
 0x1eb   : > { %v828_v32 = vpop.f32.mrf.mxu0 }
 0x1ec   : > { %v763_v46 = vpop.f32.mrf.mxu3  ;;  %v893_v30 = vpop.f32.mrf.mxu1  ;;  %1043 = vst [vmem:[%s2300_s5 + $0x1e0] sm:$0xff] %v828_v32 }
 0x1ed   : > { %1042 = vst [vmem:[%s2300_s5 + $0x1d8] sm:$0xff] %v763_v46  ;;  %v958_v34 = vpop.f32.mrf.mxu2 }
 0x1ee   : > { %1044 = vst [vmem:[%s2300_s5 + $0x1e8] sm:$0xff] %v893_v30 }
 0x1ef   : > { %1045 = vst.msk [vmem:[%s2300_s5 + $0x1f0] sm:$0xff] %vm988_vm2, %v958_v34 }
 0x1f3   : > { %v831_v11 = vpop.f32.mrf.mxu0 }
 0x1f4   : > { %v766_v10 = vpop.f32.mrf.mxu3  ;;  %v896_v12 = vpop.f32.mrf.mxu1  ;;  %1050 = vst [vmem:[%s2300_s5 + $0x218] sm:$0xff] %v831_v11 }
 0x1f5   : > { %1049 = vst [vmem:[%s2300_s5 + $0x210] sm:$0xff] %v766_v10  ;;  %v961_v13 = vpop.f32.mrf.mxu2 }
 0x1f6   : > { %1051 = vst [vmem:[%s2300_s5 + $0x220] sm:$0xff] %v896_v12 }
 0x1f7   : > { %1052 = vst.msk [vmem:[%s2300_s5 + $0x228] sm:$0xff] %vm988_vm2, %v961_v13 }
 0x1fb   : > { %v834_v14 = vpop.f32.mrf.mxu0 }
 0x1fc   : > { %v769_v40 = vpop.f32.mrf.mxu3  ;;  %v899_v48 = vpop.f32.mrf.mxu1  ;;  %1057 = vst [vmem:[%s2300_s5 + $0x250] sm:$0xff] %v834_v14 }
 0x1fd   : > { %1056 = vst [vmem:[%s2300_s5 + $0x248] sm:$0xff] %v769_v40  ;;  %v964_v56 = vpop.f32.mrf.mxu2 }
 0x1fe   : > { %1058 = vst [vmem:[%s2300_s5 + $0x258] sm:$0xff] %v899_v48 }
 0x1ff   : > { %1059 = vst.msk [vmem:[%s2300_s5 + $0x260] sm:$0xff] %vm988_vm2, %v964_v56 }
 0x203   : > { %v837_v21 = vpop.f32.mrf.mxu0 }
 0x204   : > { %v772_v45 = vpop.f32.mrf.mxu3  ;;  %v902_v63 = vpop.f32.mrf.mxu1  ;;  %1064 = vst [vmem:[%s2300_s5 + $0x288] sm:$0xff] %v837_v21 }
 0x205   : > { %1063 = vst [vmem:[%s2300_s5 + $0x280] sm:$0xff] %v772_v45  ;;  %v967_v20 = vpop.f32.mrf.mxu2 }
 0x206   : > { %1065 = vst [vmem:[%s2300_s5 + $0x290] sm:$0xff] %v902_v63 }
 0x207   : > { %1066 = vst.msk [vmem:[%s2300_s5 + $0x298] sm:$0xff] %vm988_vm2, %v967_v20 }
 0x20b   : > { %v840_v42 = vpop.f32.mrf.mxu0 }
 0x20c   : > { %v775_v3 = vpop.f32.mrf.mxu3  ;;  %v905_v24 = vpop.f32.mrf.mxu1  ;;  %1071 = vst [vmem:[%s2300_s5 + $0x2c0] sm:$0xff] %v840_v42 }
 0x20d   : > { %1070 = vst [vmem:[%s2300_s5 + $0x2b8] sm:$0xff] %v775_v3  ;;  %v970_v49 = vpop.f32.mrf.mxu2 }
 0x20e   : > { %1072 = vst [vmem:[%s2300_s5 + $0x2c8] sm:$0xff] %v905_v24 }
 0x20f   : > { %1073 = vst.msk [vmem:[%s2300_s5 + $0x2d0] sm:$0xff] %vm988_vm2, %v970_v49 }
 0x213   : > { %v843_v53 = vpop.f32.mrf.mxu0 }
 0x214   : > { %v778_v55 = vpop.f32.mrf.mxu3  ;;  %v908_v51 = vpop.f32.mrf.mxu1  ;;  %1078 = vst [vmem:[%s2300_s5 + $0x2f8] sm:$0xff] %v843_v53 }
 0x215   : > { %1077 = vst [vmem:[%s2300_s5 + $0x2f0] sm:$0xff] %v778_v55  ;;  %v973_v29 = vpop.f32.mrf.mxu2 }
 0x216   : > { %1079 = vst [vmem:[%s2300_s5 + $0x300] sm:$0xff] %v908_v51 }
 0x217   : > { %1080 = vst.msk [vmem:[%s2300_s5 + $0x308] sm:$0xff] %vm988_vm2, %v973_v29 }
 0x21b   : > { %v846_v59 = vpop.f32.mrf.mxu0 }
 0x21c   : > { %v781_v7 = vpop.f32.mrf.mxu3  ;;  %v911_v4 = vpop.f32.mrf.mxu1  ;;  %1085 = vst [vmem:[%s2300_s5 + $0x330] sm:$0xff] %v846_v59 }
 0x21d   : > { %1084 = vst [vmem:[%s2300_s5 + $0x328] sm:$0xff] %v781_v7  ;;  %v976_v6 = vpop.f32.mrf.mxu2 }
 0x21e   : > { %1086 = vst [vmem:[%s2300_s5 + $0x338] sm:$0xff] %v911_v4 }
 0x21f   : > { %1087 = vst.msk [vmem:[%s2300_s5 + $0x340] sm:$0xff] %vm988_vm2, %v976_v6 }
 0x223   : > { %v849_v28 = vpop.f32.mrf.mxu0 }
 0x224   : > { %v784_v23 = vpop.f32.mrf.mxu3  ;;  %v914_v38 = vpop.f32.mrf.mxu1  ;;  %1092 = vst [vmem:[%s2300_s5 + $0x368] sm:$0xff] %v849_v28 }
 0x225   : > { %1091 = vst [vmem:[%s2300_s5 + $0x360] sm:$0xff] %v784_v23  ;;  %v979_v41 = vpop.f32.mrf.mxu2 }
 0x226   : > { %1093 = vst [vmem:[%s2300_s5 + $0x370] sm:$0xff] %v914_v38 }
 0x227   : > { %1094 = vst.msk [vmem:[%s2300_s5 + $0x378] sm:$0xff] %vm988_vm2, %v979_v41 }
 0x228 PF: > { %s12_s9 = sadd.s32 1, %s1389_s9  }
 0x229   : > { %p9_p4 = scmp.ge.s32.totalorder %s12_s9, 4  }
 0x22b   :  { %11 = sbr.rel (!%p9_p4) target bundleno = 1 (0x1), region = 58 }

</bundles_post_ra>
